<compile_context>
chip_gen: v7x
topology: tpu7x:2x2x1
jax: 0.10.0
libtpu: 0.0.40
codegen_flags: <defaults>
</compile_context>

<pallas_src>
import functools

import jax
import jax.numpy as jnp
from jax.experimental import pallas as pl
from jax.experimental.pallas import tpu as pltpu

SMOOTH = 1.0  # BinaryDiceLoss default; p = 2 -> x**2 written as x*x below.


def _dice_kernel(p_ref, t_ref, o_ref, num_ref, den_ref, *, group):
    # p_ref, t_ref: (rt, L) spatial tile of (channel c, batch n)
    # o_ref:        (1, 1) per-(channel, batch) loss
    # num_ref/den_ref: (group, L) f32 lane-shaped accumulators (VMEM scratch)
    s = pl.program_id(2)
    ns = pl.num_programs(2)

    @pl.when(s == 0)
    def _():
        num_ref[...] = jnp.zeros_like(num_ref)
        den_ref[...] = jnp.zeros_like(den_ref)

    x = p_ref[...].astype(jnp.float32)                 # (rt, L)
    t = t_ref[...].astype(jnp.float32)                 # (rt, L)
    # sigmoid via a single EUP op (tanh) instead of exp + reciprocal.
    pred = 0.5 * (jnp.tanh(0.5 * x) + 1.0)

    rt, L = x.shape
    # Layout-preserving reshape (rt multiple of `group`, group == 8 for f32
    # rows): summing over axis 0 is cross-vreg VPU adds only -- the XLU
    # lane/sublane reduce is deferred to the finalize branch below.
    pt = (pred * t).reshape(rt // group, group, L)
    dd = (pred * pred + t * t).reshape(rt // group, group, L)
    num_ref[...] += jnp.sum(pt, axis=0)
    den_ref[...] += jnp.sum(dd, axis=0)

    @pl.when(s == ns - 1)
    def _():
        num = jnp.sum(num_ref[...], keepdims=True) + SMOOTH   # (1, 1)
        den = jnp.sum(den_ref[...], keepdims=True) + SMOOTH   # (1, 1)
        o_ref[...] = 1.0 - num / den                           # (1, 1)


def _vmem_tile_budget():
    """Per-grid-step input-tile byte budget, generation aware (best effort)."""
    try:
        kind = jax.devices()[0].device_kind.lower()
    except Exception:
        kind = ""
    # v5e's default scoped-VMEM limit is 16 MiB and the double-buffered
    # two-input footprint is ~4x the tile budget, so stay ~3 MiB there and
    # ~6 MiB on v6e/v7x (32 MiB scoped default).  The wrapper also sets
    # vmem_limit_bytes from the actual footprint, so a mis-detection here
    # cannot cause a compile failure.
    if ("v5 lite" in kind) or ("v5e" in kind) or ("v5litepod" in kind):
        return 3 * 1024 * 1024
    return 6 * 1024 * 1024


def _choose_tiling(S, itemsizes, *, lane_target=2048, tile_budget=None):
    """Pick (L, R, rt) with S = R * L; per-grid-step input block is (rt, L)."""
    it_p, it_t = itemsizes
    # Sub-32-bit dtypes pack along sublanes: bf16 rows want multiples of 16,
    # int8/fp8 want 32.
    sub_mult = {4: 8, 2: 16, 1: 32}.get(min(it_p, it_t), 8)

    # Lane width: largest multiple of 128 dividing S, capped at lane_target.
    L, best, cand = S, 0, 128
    while cand <= min(S, lane_target):
        if S % cand == 0:
            best = cand
        cand += 128
    if best:
        L = best
    R = S // L

    if tile_budget is None:
        tile_budget = _vmem_tile_budget()
    bytes_per_row = L * (it_p + it_t)          # one row of both inputs
    max_rows = max(1, tile_budget // max(1, bytes_per_row))

    if R <= max_rows:
        rt = R                                  # whole spatial column per step
    else:
        aligned = [d for d in range(sub_mult, R + 1, sub_mult) if R % d == 0]
        mult8 = [d for d in range(8, R + 1, 8) if R % d == 0]
        fit_aligned = [d for d in aligned if d <= max_rows]
        fit_8 = [d for d in mult8 if d <= max_rows]
        if fit_aligned:
            rt = max(fit_aligned)
        elif fit_8:
            rt = max(fit_8)
        elif mult8:
            # No fitting legal divisor: take the smallest legal one; the
            # wrapper raises vmem_limit_bytes to cover the larger footprint.
            rt = min(mult8)
        else:
            # No multiple-of-8 divisor at all; full column (equal-to-full-dim
            # blocks are always legal).  Footprint covered by vmem_limit_bytes.
            rt = R
    return L, R, rt


def dice_loss(predict, target, weight=None):
    """predict, target: [N, C, H, W] (same shape). Returns scalar f32 loss."""
    assert predict.shape == target.shape, "predict & target shape do not match"
    N, C, H, W = predict.shape
    S = H * W
    it_p = jnp.dtype(predict.dtype).itemsize
    it_t = jnp.dtype(target.dtype).itemsize

    L, R, rt = _choose_tiling(S, (it_p, it_t))
    n_s = R // rt
    group = 8 if rt % 8 == 0 else rt          # accumulator row count

    # Free reshapes only -- no HBM transpose.
    p = predict.reshape(N, C, R, L)
    t = target.reshape(N, C, R, L)

    # Actual VMEM footprint: double-buffered input tiles + accumulators +
    # (tiny) output blocks.  Always pass an explicit scoped-VMEM limit so the
    # rare "no fitting divisor" tiling path cannot exceed v5e's 16 MiB default.
    footprint = (2 * rt * L * (it_p + it_t)    # 2 buffers x (pred + target) tile
                 + 2 * group * L * 4           # num/den accumulators
                 + 64 * 1024)                  # output blocks + slack
    vmem_limit = int(min(max(2 * footprint, 16 * 1024 * 1024),
                         100 * 1024 * 1024))

    kernel = functools.partial(_dice_kernel, group=group)

    per_cn = pl.pallas_call(
        kernel,
        out_shape=jax.ShapeDtypeStruct((C, N, 1, 1), jnp.float32),
        grid_spec=pltpu.PrefetchScalarGridSpec(
            num_scalar_prefetch=0,
            grid=(C, N, n_s),
            in_specs=[
                pl.BlockSpec((None, None, rt, L), lambda c, n, s: (n, c, s, 0)),
                pl.BlockSpec((None, None, rt, L), lambda c, n, s: (n, c, s, 0)),
            ],
            out_specs=pl.BlockSpec((None, None, 1, 1),
                                   lambda c, n, s: (c, n, 0, 0)),
            scratch_shapes=[
                pltpu.VMEM((group, L), jnp.float32),   # partial num (lane shape)
                pltpu.VMEM((group, L), jnp.float32),   # partial den (lane shape)
            ],
        ),
        compiler_params=pltpu.CompilerParams(
            # (channel, batch) shard across TensorCores (v7x megacore); the
            # spatial reduction axis is last and runs sequentially.
            dimension_semantics=("parallel", "parallel", "arbitrary"),
            vmem_limit_bytes=vmem_limit,
        ),
    )(p, t)

    per_cn = per_cn.reshape(C, N)                 # (C, N) per-(channel, batch)
    per_channel = jnp.mean(per_cn, axis=1)        # BinaryDiceLoss 'mean' over N
    if weight is not None:
        per_channel = per_channel * weight        # optional DiceLoss weight
    # DiceLoss sums the per-channel losses and divides by the channel count.
    return jnp.sum(per_channel) / C


def _dice_loss_ref(predict, target):
    # Pure-JAX reference matching the PyTorch module semantics.
    N, C = predict.shape[0], predict.shape[1]
    pred = jax.nn.sigmoid(predict.astype(jnp.float32))
    targ = target.astype(jnp.float32)
    total = 0.0
    for i in range(C):
        p = pred[:, i].reshape(N, -1)
        t = targ[:, i].reshape(N, -1)
        num = jnp.sum(p * t, axis=1) + SMOOTH
        den = jnp.sum(p ** 2 + t ** 2, axis=1) + SMOOTH
        total = total + jnp.mean(1.0 - num / den)
    return total / C


if __name__ == "__main__":
    key = jax.random.PRNGKey(0)
    k1, k2 = jax.random.split(key)
    N, C, H, W = 2, 4, 16, 16
    predict = jax.random.normal(k1, (N, C, H, W), dtype=jnp.float32)
    # binary-ish target
    target = (jax.random.uniform(k2, (N, C, H, W)) > 0.5).astype(jnp.float32)

    out = dice_loss(predict, target)
    out = jax.block_until_ready(out)

    ref = _dice_loss_ref(predict, target)
    assert jnp.allclose(out, ref, atol=1e-5, rtol=1e-5), (out, ref)
    print("KERNEL_OK")
</pallas_src>

<mosaic_0001>
module attributes {stable_mosaic.version = 11 : i64} {
  func.func @_dice_kernel(%arg0: i32, %arg1: i32, %arg2: i32, %arg3: memref<1x1x1x256xf32, #tpu.memory_space<vmem>>, %arg4: memref<1x1x1x256xf32, #tpu.memory_space<vmem>>, %arg5: memref<1x1x1x1xf32, #tpu.memory_space<vmem>>, %arg6: memref<1x256xf32, #tpu.memory_space<vmem>>, %arg7: memref<1x256xf32, #tpu.memory_space<vmem>>) attributes {dimension_semantics = [#tpu.dimension_semantics<parallel>, #tpu.dimension_semantics<parallel>, #tpu.dimension_semantics<arbitrary>], iteration_bounds = array<i64: 4, 2, 1>, scalar_prefetch = 0 : i64, scratch_operands = 2 : i64, tpu.core_type = #tpu.core_type<tc>, window_params = [{transform_indices = @transform_0, window_bounds = array<i64: 1, 1, 1, 256>}, {transform_indices = @transform_1, window_bounds = array<i64: 1, 1, 1, 256>}, {transform_indices = @transform_2, window_bounds = array<i64: 1, 1, 1, 1>}]} {
    %c0_i32 = arith.constant 0 : i32
    %0 = arith.cmpi eq, %arg2, %c0_i32 : i32
    %1 = arith.extui %0 : i1 to i32
    %c0_i32_0 = arith.constant 0 : i32
    %2 = arith.cmpi ne, %1, %c0_i32_0 : i32
    scf.if %2 {
      %cst_22 = arith.constant 0.000000e+00 : f32
      %31 = vector.broadcast %cst_22 : f32 to vector<1x256xf32>
      %c0_23 = arith.constant 0 : index
      %c0_24 = arith.constant 0 : index
      %32 = vector.load %arg6[%c0_23, %c0_24] : memref<1x256xf32, #tpu.memory_space<vmem>>, vector<1x256xf32>
      tpu.vector_store %arg6[%c0_23, %c0_24], %31 {strides = array<i32>} : memref<1x256xf32, #tpu.memory_space<vmem>>, vector<1x256xf32>,
      %cst_25 = arith.constant 0.000000e+00 : f32
      %33 = vector.broadcast %cst_25 : f32 to vector<1x256xf32>
      %c0_26 = arith.constant 0 : index
      %c0_27 = arith.constant 0 : index
      %34 = vector.load %arg7[%c0_26, %c0_27] : memref<1x256xf32, #tpu.memory_space<vmem>>, vector<1x256xf32>
      tpu.vector_store %arg7[%c0_26, %c0_27], %33 {strides = array<i32>} : memref<1x256xf32, #tpu.memory_space<vmem>>, vector<1x256xf32>,
    } else {
    }
    %c0 = arith.constant 0 : index
    %c0_1 = arith.constant 0 : index
    %c0_2 = arith.constant 0 : index
    %c0_3 = arith.constant 0 : index
    %3 = vector.load %arg3[%c0, %c0_1, %c0_2, %c0_3] : memref<1x1x1x256xf32, #tpu.memory_space<vmem>>, vector<1x1x1x256xf32>
    %4 = vector.shape_cast %3 : vector<1x1x1x256xf32> to vector<1x256xf32>
    %c0_4 = arith.constant 0 : index
    %c0_5 = arith.constant 0 : index
    %c0_6 = arith.constant 0 : index
    %c0_7 = arith.constant 0 : index
    %5 = vector.load %arg4[%c0_4, %c0_5, %c0_6, %c0_7] : memref<1x1x1x256xf32, #tpu.memory_space<vmem>>, vector<1x1x1x256xf32>
    %6 = vector.shape_cast %5 : vector<1x1x1x256xf32> to vector<1x256xf32>
    %cst = arith.constant 5.000000e-01 : f32
    %7 = vector.broadcast %cst : f32 to vector<1x256xf32>
    %8 = arith.mulf %7, %4 : vector<1x256xf32>
    %9 = math.tanh %8 : vector<1x256xf32>
    %cst_8 = arith.constant 1.000000e+00 : f32
    %10 = vector.broadcast %cst_8 : f32 to vector<1x256xf32>
    %11 = arith.addf %9, %10 : vector<1x256xf32>
    %cst_9 = arith.constant 5.000000e-01 : f32
    %12 = vector.broadcast %cst_9 : f32 to vector<1x256xf32>
    %13 = arith.mulf %12, %11 : vector<1x256xf32>
    %14 = arith.mulf %13, %6 : vector<1x256xf32>
    %15 = vector.shape_cast %14 : vector<1x256xf32> to vector<1x1x256xf32>
    %16 = arith.mulf %13, %13 : vector<1x256xf32>
    %17 = arith.mulf %6, %6 : vector<1x256xf32>
    %18 = arith.addf %16, %17 : vector<1x256xf32>
    %19 = vector.shape_cast %18 : vector<1x256xf32> to vector<1x1x256xf32>
    %c0_10 = arith.constant 0 : index
    %c0_11 = arith.constant 0 : index
    %20 = vector.load %arg6[%c0_10, %c0_11] : memref<1x256xf32, #tpu.memory_space<vmem>>, vector<1x256xf32>
    %cst_12 = arith.constant dense<0.000000e+00> : vector<1x256xf32>
    %21 = vector.multi_reduction <add>, %15, %cst_12 [0] : vector<1x1x256xf32> to vector<1x256xf32>
    %22 = arith.addf %20, %21 : vector<1x256xf32>
    %c0_13 = arith.constant 0 : index
    %c0_14 = arith.constant 0 : index
    %23 = vector.load %arg6[%c0_13, %c0_14] : memref<1x256xf32, #tpu.memory_space<vmem>>, vector<1x256xf32>
    tpu.vector_store %arg6[%c0_13, %c0_14], %22 {strides = array<i32>} : memref<1x256xf32, #tpu.memory_space<vmem>>, vector<1x256xf32>,
    %c0_15 = arith.constant 0 : index
    %c0_16 = arith.constant 0 : index
    %24 = vector.load %arg7[%c0_15, %c0_16] : memref<1x256xf32, #tpu.memory_space<vmem>>, vector<1x256xf32>
    %cst_17 = arith.constant dense<0.000000e+00> : vector<1x256xf32>
    %25 = vector.multi_reduction <add>, %19, %cst_17 [0] : vector<1x1x256xf32> to vector<1x256xf32>
    %26 = arith.addf %24, %25 : vector<1x256xf32>
    %c0_18 = arith.constant 0 : index
    %c0_19 = arith.constant 0 : index
    %27 = vector.load %arg7[%c0_18, %c0_19] : memref<1x256xf32, #tpu.memory_space<vmem>>, vector<1x256xf32>
    tpu.vector_store %arg7[%c0_18, %c0_19], %26 {strides = array<i32>} : memref<1x256xf32, #tpu.memory_space<vmem>>, vector<1x256xf32>,
    %c0_i32_20 = arith.constant 0 : i32
    %28 = arith.cmpi eq, %arg2, %c0_i32_20 : i32
    %29 = arith.extui %28 : i1 to i32
    %c0_i32_21 = arith.constant 0 : i32
    %30 = arith.cmpi ne, %29, %c0_i32_21 : i32
    scf.if %30 {
      %c0_22 = arith.constant 0 : index
      %c0_23 = arith.constant 0 : index
      %31 = vector.load %arg6[%c0_22, %c0_23] : memref<1x256xf32, #tpu.memory_space<vmem>>, vector<1x256xf32>
      %32 = vector.shape_cast %31 : vector<1x256xf32> to vector<1x1x256xf32>
      %cst_24 = arith.constant dense<0.000000e+00> : vector<1xf32>
      %33 = vector.multi_reduction <add>, %32, %cst_24 [1, 2] : vector<1x1x256xf32> to vector<1xf32>
      %34 = vector.shape_cast %33 : vector<1xf32> to vector<1x1x1xf32>
      %35 = vector.extract %34[0, 0, 0] : f32 from vector<1x1x1xf32>
      %36 = vector.broadcast %35 : f32 to vector<1x1xf32>
      %cst_25 = arith.constant 1.000000e+00 : f32
      %37 = vector.broadcast %cst_25 : f32 to vector<1x1xf32>
      %38 = arith.addf %36, %37 : vector<1x1xf32>
      %c0_26 = arith.constant 0 : index
      %c0_27 = arith.constant 0 : index
      %39 = vector.load %arg7[%c0_26, %c0_27] : memref<1x256xf32, #tpu.memory_space<vmem>>, vector<1x256xf32>
      %40 = vector.shape_cast %39 : vector<1x256xf32> to vector<1x1x256xf32>
      %cst_28 = arith.constant dense<0.000000e+00> : vector<1xf32>
      %41 = vector.multi_reduction <add>, %40, %cst_28 [1, 2] : vector<1x1x256xf32> to vector<1xf32>
      %42 = vector.shape_cast %41 : vector<1xf32> to vector<1x1x1xf32>
      %43 = vector.extract %42[0, 0, 0] : f32 from vector<1x1x1xf32>
      %44 = vector.broadcast %43 : f32 to vector<1x1xf32>
      %cst_29 = arith.constant 1.000000e+00 : f32
      %45 = vector.broadcast %cst_29 : f32 to vector<1x1xf32>
      %46 = arith.addf %44, %45 : vector<1x1xf32>
      %47 = arith.divf %38, %46 : vector<1x1xf32>
      %cst_30 = arith.constant 1.000000e+00 : f32
      %48 = vector.broadcast %cst_30 : f32 to vector<1x1xf32>
      %49 = arith.subf %48, %47 : vector<1x1xf32>
      %c0_31 = arith.constant 0 : index
      %c0_32 = arith.constant 0 : index
      %c0_33 = arith.constant 0 : index
      %c0_34 = arith.constant 0 : index
      %50 = vector.load %arg5[%c0_31, %c0_32, %c0_33, %c0_34] : memref<1x1x1x1xf32, #tpu.memory_space<vmem>>, vector<1x1x1x1xf32>
      %51 = vector.shape_cast %50 : vector<1x1x1x1xf32> to vector<1x1xf32>
      %52 = vector.shape_cast %49 : vector<1x1xf32> to vector<1x1x1x1xf32>
      tpu.vector_store %arg5[%c0_31, %c0_32, %c0_33, %c0_34], %52 {strides = array<i32>} : memref<1x1x1x1xf32, #tpu.memory_space<vmem>>, vector<1x1x1x1xf32>,
    } else {
    }
    return
  }
  func.func @transform_0(%arg0: i32, %arg1: i32, %arg2: i32) -> (i32, i32, i32, i32) {
    %c0_i32 = arith.constant 0 : i32
    %c0_i32_0 = arith.constant 0 : i32
    return %arg1, %arg0, %arg2, %c0_i32 : i32, i32, i32, i32
  }
  func.func @transform_1(%arg0: i32, %arg1: i32, %arg2: i32) -> (i32, i32, i32, i32) {
    %c0_i32 = arith.constant 0 : i32
    %c0_i32_0 = arith.constant 0 : i32
    return %arg1, %arg0, %arg2, %c0_i32 : i32, i32, i32, i32
  }
  func.func @transform_2(%arg0: i32, %arg1: i32, %arg2: i32) -> (i32, i32, i32, i32) {
    %c0_i32 = arith.constant 0 : i32
    %c0_i32_0 = arith.constant 0 : i32
    %c0_i32_1 = arith.constant 0 : i32
    return %arg0, %arg1, %c0_i32, %c0_i32_0 : i32, i32, i32, i32
  }
}

</mosaic_0001>

<bundles_post_ra>
// kernel: tpu_custom_call.1
= control target key start
LH: loop header
LB: loop body
LE: loop exit
PB: predicated region body
PF: predicated region fallthrough
CT: control target
= control target key end

     0   :  { %7 = vsyncpa [#allocation5], 0  ;;  %s923_s0 = inlined_call_operand.hbm [shape: f32[2,4,1,256], index: 0, kind: input, shape index: {}]   ;;  %s924_s1 = inlined_call_operand.hbm [shape: f32[2,4,1,256], index: 1, kind: input, shape index: {}]   ;;  %s925_s2 = inlined_call_operand.vmem [shape: f32[4,2,1,1], index: 2, kind: output, shape index: {}]  }
   0x1   :  { %9 = vsyncpa [#allocation5 + $0x1], 0 }
   0x2   :  { %10 = vsyncpa [#allocation7], 0 }
   0x3   :  { %12 = vsyncpa [#allocation7 + $0x1], 0  ;;  %s709_s9 = smov 0   ;;  %s711_s10 = smov 0  }
   0x4   :  { %s713_s11 = smov 0   ;;  %s715_s12 = smov 0  }
   0x5   :  { %s717_s13 = smov 0   ;;  %s719_s14 = smov 0  }
   0x6   :  { %s721_s15 = smov 0   ;;  %s723_s16 = smov 0  }
   0x7 LB: > { %s456_s17 = sadd.s32 4294967295, %s689_s16   ;;  %s33_s18 = sadd.s32 1, %s681_s14  ;;  %s689_s16 = sphi %s723_s16, %s18_s16   ;;  %s685_s15 = sphi %s721_s15, %s943_s15   ;;  %s681_s14 = sphi %s719_s14, %s942_s14   ;;  %s677_s13 = sphi %s717_s13, %s941_s13   ;;  %s673_s12 = sphi %s715_s12, %s940_s12   ;;  %s669_s11 = sphi %s713_s11, %s939_s11   ;;  %s665_s10 = sphi %s711_s10, %s938_s10   ;;  %s661_s9 = sphi %s709_s9, %s937_s9  }
   0x8   : > { %p35_p0 = scmp.ge.s32.totalorder %s33_s18, 2  ;;  %s37_s19 = sadd.s32 1, %s685_s15 }
   0x9   : > { %s48_s20 = sadd.s32 1, %s669_s11  ;;  %p55_p1 = scmp.ne.s32.totalorder %s669_s11, %s665_s10 }
   0xa   : > { %s945_s18 = smov (%p35_p0, %s33_s18), 0  ;;  %s947_s19 = smov (!%p35_p0, %s37_s19), %s685_s15 }
   0xb   : > { %s41_s21 = ssub.s32 %s681_s14, %s945_s18  ;;  %p56_p2 = scmp.eq.s32.totalorder %s689_s16, 0 }
   0xc   : > { %p39_p3 = scmp.ge.s32.totalorder %s947_s19, 4  ;;  %p61_p4 = scmp.ne.s32.totalorder %s665_s10, %s661_s9 }
   0xd   : > { %p760_p5 = por %p56_p2, %p55_p1  ;;  %p62_p6 = scmp.eq.s32.totalorder %s456_s17, 0 }
   0xe   : > { %s949_s19 = smov (%p39_p3, %s947_s19), 0  ;;  %p489_p8 = scmp.lt.s32.totalorder %s689_s16, 8 }
   0xf   : > { %p766_p7 = por %p62_p6, %p61_p4  ;;  %s42_s24 = ssub.s32 %s685_s15, %s949_s19 }
  0x10   : > { %s43_s25 = sor.u32 %s42_s24, %s41_s21  ;;  %s774_s26 = sand.u32 1, %s669_s11  }
  0x11   : > { %s928_s23 = scalar_select %p766_p7, 1, 0 }
  0x12   : > { %p46_p9 = scmp.eq.s32.totalorder %s43_s25, 0  ;;  %s460_s27 = sshll.u32 %s774_s26, 1 }
  0x13   : > { %s461_s28 = sshll.u32 %s685_s15, 1  ;;  %s462_s30 = sshll.u32 %s681_s14, 3 }
  0x14   : > { %s779_s29 = scalar_select %p46_p9, %s669_s11, %s48_s20  }
  0x15   : > { %s782_s3 = sadd.s32 %s462_s30, %s461_s28  ;;  %s147_s4 = scalar_lea.vmem [#allocation4], %s460_s27 }
  0x16   : > { %s159_s5 = sshll.u32 %s147_s4, 4  ;;  %s463_s6 = sshll.u32 %s782_s3, 4  ;;  %s787_s5 = int_to_ptr.vmem [resolvable:$true] %s159_s5 }
  0x17   : > { %s794_s9 = scalar_lea.hbm %s923_s0, %s463_s6  ;;  %p800_p10 = pnand %p489_p8, %p760_p5 }
  0x18   : > { %s144_s20 = scalar_lea.sflag [#allocation5], %s774_s26  ;;  %s559_s21 = scalar_lea.hbm %s794_s9, 32 }
  0x19   : > { %p560_p13 = scmp.ne.s32.totalorder %s794_s9, %s559_s21  ;;  %p561_p0 = pneg %p800_p10 }
  0x1a   : > { %s564_s25 = scalar_lea.hbm %s923_s0, 256  ;;  %p565_p3 = scmp.lt.u32.totalorder %s794_s9, %s923_s0 }
  0x1b   : > { %p562_p1 = pnand %p561_p0, %p560_p13  ;;  %p566_p4 = scmp.lt.u32.totalorder %s564_s25, %s559_s21 }
  0x1c   : > { %p568_p6 = scmp.lt.u32.totalorder %s559_s21, %s794_s9 }
  0x1d   : > { %p563_p2 = pneg %p562_p1  ;;  %p567_p5 = por %p566_p4, %p565_p3 }
  0x1f   : > { %p569_p8 = por %p568_p6, %p567_p5 }
  0x21   : > { %p570_p9 = pnand %p569_p8, %p563_p2 }
  0x23   : > { %573 = shalt.err (!%p570_p9)
}
  0x24   : > { %s574_s4 = scalar_lea.vmem %s787_s5, 32  ;;  %s691_s7 = smov [#allocation4]  }
  0x25   : > { %p575_p13 = scmp.ne.s32.totalorder %s787_s5, %s574_s4  ;;  %s579_s8 = sshll.u32 %s691_s7, 4  ;;  %s580_s8 = int_to_ptr.vmem [resolvable:$false] %s579_s8 }
  0x26   : > { %s581_s22 = scalar_lea.vmem %s580_s8, 64  ;;  %p582_p12 = scmp.lt.s32.totalorder %s787_s5, %s580_s8 }
  0x27   : > { %p577_p1 = pnand %p575_p13, %p561_p0  ;;  %p583_p3 = scmp.lt.s32.totalorder %s581_s22, %s574_s4 }
  0x29   : > { %p578_p11 = pneg %p577_p1  ;;  %p584_p4 = por %p583_p3, %p582_p12 }
  0x2b   : > { %p585_p5 = pnand %p584_p4, %p578_p11 }
  0x2d   : > { %588 = shalt.err (!%p585_p5)
}
  0x2e   : > { %485 = dma.hbm_to_vmem [thread:$0]  (!%p800_p10), %s794_s9, 32, %s787_s5, %s144_s20  }
  0x2f   : > { %p930_p2 = scmp.lt.s32.totalorder %s689_s16, 9  ;;  %p931_p6 = scmp.ge.s32.totalorder %s689_s16, 1 }
  0x30   : > { %s845_s28 = scalar_lea.hbm %s924_s1, %s463_s6  ;;  %s170_s30 = scalar_lea.vmem [#allocation6], %s460_s27 }
  0x31   : > { %p836_p8 = pnand %p931_p6, %p930_p2  ;;  %s182_s4 = sshll.u32 %s170_s30, 4  ;;  %s183_s4 = int_to_ptr.vmem [resolvable:$true] %s182_s4 }
  0x32   : > { %s167_s5 = scalar_lea.sflag [#allocation7], %s774_s26  ;;  %s589_s9 = scalar_lea.hbm %s845_s28, 32 }
  0x33   : > { %s932_s21 = scalar_select %p836_p8, 1, 0 }
  0x34   : > { %p590_p11 = scmp.ne.s32.totalorder %s845_s28, %s589_s9  ;;  %s594_s6 = scalar_lea.hbm %s924_s1, 256 }
  0x35   : > { %p595_p13 = scmp.lt.u32.totalorder %s845_s28, %s924_s1  ;;  %p596_p1 = scmp.lt.u32.totalorder %s594_s6, %s589_s9 }
  0x36   : > { %p592_p12 = pnand %p590_p11, %p561_p0  ;;  %p598_p4 = scmp.lt.u32.totalorder %s589_s9, %s845_s28 }
  0x37   : > { %p597_p3 = por %p596_p1, %p595_p13 }
  0x38   : > { %p593_p9 = pneg %p592_p12 }
  0x39   : > { %p599_p5 = por %p598_p4, %p597_p3 }
  0x3b   : > { %p600_p2 = pnand %p599_p5, %p593_p9 }
  0x3d   : > { %603 = shalt.err (!%p600_p2)
}
  0x3e   : > { %s604_s26 = scalar_lea.vmem %s183_s4, 32  ;;  %s692_s27 = smov [#allocation6]  }
  0x3f   : > { %p605_p6 = scmp.ne.s32.totalorder %s183_s4, %s604_s26  ;;  %s609_s22 = sshll.u32 %s692_s27, 4  ;;  %s610_s22 = int_to_ptr.vmem [resolvable:$false] %s609_s22 }
  0x40   : > { %s611_s24 = scalar_lea.vmem %s610_s22, 64  ;;  %p612_p7 = scmp.lt.s32.totalorder %s183_s4, %s610_s22 }
  0x41   : > { %p607_p11 = pnand %p605_p6, %p561_p0  ;;  %p613_p8 = scmp.lt.s32.totalorder %s611_s24, %s604_s26 }
  0x43   : > { %p608_p12 = pneg %p607_p11  ;;  %p614_p1 = por %p613_p8, %p612_p7 }
  0x45   : > { %p615_p13 = pnand %p614_p1, %p608_p12 }
  0x47   : > { %618 = shalt.err (!%p615_p13)
}
  0x48   : > { %488 = dma.hbm_to_vmem [thread:$0]  (!%p800_p10), %s845_s28, 32, %s183_s4, %s167_s5  }
  0x49   : > { %p933_p9 = scmp.ne.s32.totalorder %s932_s21, 0 }
  0x4a   : > { %s193_s25 = sand.u32 (!%p933_p9), 1, %s665_s10   ;;  %p934_p0 = scmp.ne.s32.totalorder (!%p933_p9), %s928_s23, 0 }
  0x4b   : > { %191 = sbr.rel (%p933_p9) target bundleno = 347 (0x15b), region = 28  ;;  %s469_s30 = sshll.u32 (!%p933_p9), %s193_s25, 1 }
  0x4c   : > { %s194_s9 = scalar_lea.sflag (!%p933_p9), [#allocation5], %s193_s25  ;;  %s197_s3 = scalar_lea.vmem (!%p933_p9), [#allocation4], %s469_s30 }
  0x52   : > { %652 = dma.done.wait (%p934_p0), %s194_s9, 32  }
  0x53   : > { %654 = vsyncadd (%p934_p0), %s194_s9, 4294967264  ;;  %s203_s20 = scalar_lea.sflag [#allocation7], %s193_s25  ;;  %s206_s6 = scalar_lea.vmem [#allocation6], %s469_s30 }
  0x54   : > { %656 = dma.done.wait (%p934_p0), %s203_s20, 32  }
  0x55   : > { %658 = vsyncadd (%p934_p0), %s203_s20, 4294967264  ;;  %v245_v0 = vlaneseq  ;;  %v693_v2 = vmov 0.0   ;;  %v251_v3 = vld [vmem:[%s197_s3] sm:$0x3]  ;;  %v252_v7 = vld [vmem:[%s206_s6] sm:$0x3] }
  0x56   : > { %v253_v4 = vmul.f32 0.5, %v251_v3  ;;  %v259_v9 = vmul.f32 %v252_v7, %v252_v7  ;;  %vm288_vm1 = vcmask 1040384   ;;  %p234_p7 = scmp.lt.s32.totalorder %s677_s13, 3  ;;  %p236_p10 = scmp.lt.s32.totalorder %s673_s12, 1  ;;  %vm332_vm2 = vcmask 0  }
  0x57   : > { %vm880_vm0 = vcmp.lt.s32.totalorder %v245_v0, 256  ;;  %v279_v17 = vshrl.u32 %v245_v0, 7 }
  0x58   : > { %249 = vst.msk [vmem:[#allocation2] sm:$0x3] %vm880_vm0, %v693_v2  ;;  %250 = vst.msk [vmem:[#allocation3] sm:$0x3] %vm880_vm0, %v693_v2  ;;  %555 = vtanh.f32 %v253_v4  ;;  %s951_s13 = smov (!%p234_p7, %s677_s13), 3  ;;  %s953_s12 = smov (!%p236_p10, %s673_s12), 1 }
  0x59   : > { %v280_v18 = vsub.s32 0, %v279_v17  ;;  %v284_v19 = vsub.s32 1, %v279_v17  ;;  %s471_s21 = sshll.u32 %s951_s13, 1 }
  0x5a   : > { %s239_s28 = sadd.s32 %s471_s21, %s953_s12 }
  0x5b   : > { %s240_s7 = scalar_lea.vmem %s925_s2, %s239_s28 }
  0x5f   : > { %v261_v10 = vld [vmem:[#allocation2] sm:$0x3]  ;;  %v269_v13 = vld [vmem:[#allocation3] sm:$0x3] }
  0x62   : > { %v556_v5 = vpop.eup %555 }
  0x63   : > { %v255_v6 = vadd.f32 1.0, %v556_v5 }
  0x65   : > { %v256_v8 = vmul.f32 0.5, %v255_v6 }
  0x67   : > { %v257_v11 = vmul.f32 %v256_v8, %v252_v7  ;;  %v258_v12 = vmul.f32 %v256_v8, %v256_v8 }
  0x69   : > { %v260_v14 = vadd.f32 %v259_v9, %v258_v12  ;;  %v263_v15 = vadd.f32 %v261_v10, %v257_v11 }
  0x6b   : > { %268 = vst.msk [vmem:[#allocation2] sm:$0x3] %vm880_vm0, %v263_v15  ;;  %v271_v16 = vadd.f32 %v269_v13, %v260_v14 }
  0x6d   : > { %272 = vst.msk [vmem:[#allocation3] sm:$0x3] %vm880_vm0, %v271_v16 }
  0x72   : > { %v276_v20 = vld [vmem:[#allocation2] sm:$0x3] }
  0x73   : > { %v281_v21 = vrot.slane %v276_v20, %v280_v18  ;;  %v285_v22 = vrot.slane %v276_v20, %v284_v19 }
  0x74   : > { %v303_v23 = vld [vmem:[#allocation3] sm:$0x3] }
  0x75   : > { %v289_v24 = vsel %vm288_vm1, %v281_v21, 0.0  ;;  %v290_v25 = vsel %vm288_vm1, %v285_v22, 0.0  ;;  %v308_v26 = vrot.slane %v303_v23, %v280_v18  ;;  %v312_v27 = vrot.slane %v303_v23, %v284_v19 }
  0x76   : > { %v291_v28 = vadd.f32 %v290_v25, %v289_v24 }
  0x77   : > { %v315_v29 = vsel %vm288_vm1, %v308_v26, 0.0  ;;  %v316_v30 = vsel %vm288_vm1, %v312_v27, 0.0 }
  0x78   : > { %292 = vadd.xlane.f32.xlu0 %v291_v28  ;;  %v317_v31 = vadd.f32 %v316_v30, %v315_v29 }
  0x7c   : > { %318 = vadd.xlane.f32.xlu0 %v317_v31 }
 0x105   : > { %v293_v32 = vpop.xlane.xlu0 %292 }
 0x106   : > { %v294_v33 = vrot.slane %v293_v32, 4 }
 0x108   : > { %v295_v34 = vadd.f32 %v294_v33, %v293_v32 }
 0x109   : > { %v319_v35 = vpop.xlane.xlu0 %318 }
 0x10a   : > { %v296_v36 = vrot.slane %v295_v34, 2  ;;  %v320_v37 = vrot.slane %v319_v35, 4 }
 0x10c   : > { %v321_v38 = vadd.f32 %v320_v37, %v319_v35  ;;  %v297_v39 = vadd.f32 %v296_v36, %v295_v34 }
 0x10e   : > { %v322_v40 = vrot.slane %v321_v38, 2  ;;  %v298_v41 = vrot.slane %v297_v39, 1 }
 0x110   : > { %v323_v42 = vadd.f32 %v322_v40, %v321_v38  ;;  %v299_v43 = vadd.f32 %v298_v41, %v297_v39 }
 0x112   : > { %474 = vpush %v299_v43  ;;  %v324_v44 = vrot.slane %v323_v42, 1 }
 0x114   : > { %v325_v45 = vadd.f32 %v324_v44, %v323_v42 }
 0x116   : > { %476 = vpush %v325_v45 }
 0x143   : > { %s475_s23 = spop %474 }
 0x144   : > { %v301_v48 = vstv %s475_s23 }
 0x145   : > { %v302_v49 = vadd.f32 1.0, %v301_v48 }
 0x147   : > { %s477_s17 = spop %476 }
 0x148   : > { %v327_v46 = vstv %s477_s17 }
 0x149   : > { %v328_v47 = vadd.f32 1.0, %v327_v46 }
 0x14b   : > { %557 = vrcp.f32 %v328_v47 }
 0x155   : > { %v558_v50 = vpop.eup %557 }
 0x156   : > { %v330_v51 = vmul.f32 %v558_v50, %v302_v49 }
 0x158   : > { %v331_v52 = vsub.f32 1.0, %v330_v51 }
 0x15a   : > { %333 = vst.msk [vmem:[%s240_s7] sm:$0x1] %vm332_vm2, %v331_v52 }
 0x15b PF: > { %s18_s16 = sadd.s32 1, %s689_s16   ;;  %s937_s9 = smov %s665_s10 }
 0x15c   : > { %p15_p8 = scmp.ge.s32.totalorder %s18_s16, 10   ;;  %s938_s10 = smov %s669_s11 }
 0x15d   : > { %s939_s11 = smov %s779_s29  ;;  %s940_s12 = smov %s681_s14 }
 0x15e   : > { %s941_s13 = smov %s685_s15  ;;  %s942_s14 = smov %s945_s18 }
 0x15f   : > { %s943_s15 = smov %s949_s19  ;;  %17 = sbr.rel (!%p15_p8) target bundleno = 7 (0x7), region = 89 }
 0x166   :  { %359 = vsyncpa [#allocation5], 1 }
 0x167   :  { %361 = vsyncpa [#allocation5 + $0x1], 1 }
 0x168   :  { %362 = vsyncpa [#allocation7], 1 }
 0x169   :  { %364 = vsyncpa [#allocation7 + $0x1], 1 }

</bundles_post_ra>
